<compile_context>
chip_gen: v6e
topology: v6e:2x2x1
jax: 0.10.0
libtpu: 0.0.40
codegen_flags: <defaults>
</compile_context>

<pallas_src>
import functools

import jax
import jax.numpy as jnp
from jax import lax
from jax.experimental import pallas as pl
from jax.experimental.pallas import tpu as pltpu


# ------------------------------ Pallas kernel --------------------------------
def conv_bn_relu_kernel(patches_ref, w_ref, bias_ref, o_ref):
    # patches_ref: (CKKp, TN)   im2col'd input tile, lane dim = B*H*W (lane-dense)
    # w_ref:       (Cout, CKKp) conv weight with BatchNorm scale folded in
    # bias_ref:    (Cout, 1)    folded conv-bias + BatchNorm shift
    # o_ref:       (Cout, TN)   lane-dense output tile
    acc = jnp.dot(w_ref[...], patches_ref[...],
                  preferred_element_type=jnp.float32)           # conv as one MXU matmul
    o_ref[...] = jnp.maximum(acc + bias_ref[...], 0.0).astype(o_ref.dtype)  # BN shift + ReLU


# ------------------------------- JAX wrapper ----------------------------------
def _im2col(x, k, ckk_pad):
    """NCHW, stride=1, 'same' padding (odd k). Returns (ckk_pad, B*H*W) with the
    contraction index ordered (ci, ky, kx) to match torch weight.reshape(Cout,-1),
    zero-padded along the contraction dim up to ckk_pad (multiple of 8)."""
    B, C, H, W = x.shape
    p = k // 2
    xp = jnp.pad(x, ((0, 0), (0, 0), (p, p), (p, p)))
    taps = [xp[:, :, ky:ky + H, kx:kx + W] for ky in range(k) for kx in range(k)]
    cols = jnp.stack(taps, axis=2)                  # (B, Cin, K*K, H, W)
    cols = jnp.transpose(cols, (1, 2, 0, 3, 4))     # (Cin, K*K, B, H, W)
    patches = cols.reshape(C * k * k, B * H * W)    # (Cin*K*K, B*H*W)
    pad = ckk_pad - C * k * k
    if pad:
        patches = jnp.pad(patches, ((0, pad), (0, 0)))
    return patches


def fold_conv_bn_params(w, b, gamma, beta, mean, var, eps=1e-5):
    """One-time parameter fold (NOT per call): BatchNorm scale folds into the conv
    weight, conv bias + BatchNorm running stats collapse into a per-channel bias."""
    Cout, Cin, Kh, Kw = w.shape
    scale = gamma * lax.rsqrt(var + eps)                                  # (Cout,)
    w2d = (w.reshape(Cout, -1) * scale[:, None]).astype(jnp.float32)     # (Cout, Cin*K*K)
    bias = ((b - mean) * scale + beta).reshape(Cout, 1).astype(jnp.float32)
    ckk = Cin * Kh * Kw
    ckk_pad = -(-ckk // 8) * 8                       # align contraction dim to sublanes
    if ckk_pad != ckk:
        w2d = jnp.pad(w2d, ((0, 0), (0, ckk_pad - ckk)))
    return w2d, bias


def _pick_lane_tile(bhw):
    """Largest lane tile <= 2048 that is a multiple of 128 and divides bhw."""
    if bhw % 128 != 0:
        return bhw
    for t in (2048, 1024, 512, 256, 128):
        if t <= bhw and bhw % t == 0:
            return t
    return bhw


@functools.partial(jax.jit, static_argnames=("k",))
def conv_norm_act(x, w2d, bias, *, k):
    B, Cin, H, W = x.shape
    Cout, ckk_pad = w2d.shape
    bhw = B * H * W
    tn = _pick_lane_tile(bhw)

    patches = _im2col(x, k, ckk_pad)                 # (ckk_pad, B*H*W)

    y = pl.pallas_call(
        conv_bn_relu_kernel,
        out_shape=jax.ShapeDtypeStruct((Cout, bhw), jnp.float32),
        grid_spec=pltpu.PrefetchScalarGridSpec(
            num_scalar_prefetch=0,
            grid=(bhw // tn,),                       # tile the lane (B*H*W) dim
            in_specs=[
                pl.BlockSpec((ckk_pad, tn), lambda j: (0, j)),
                pl.BlockSpec((Cout, ckk_pad), lambda j: (0, 0)),
                pl.BlockSpec((Cout, 1), lambda j: (0, 0)),
            ],
            out_specs=pl.BlockSpec((Cout, tn), lambda j: (0, j)),
        ),
        compiler_params=pltpu.CompilerParams(dimension_semantics=("parallel",)),
    )(patches, w2d, bias)

    y = y.reshape(Cout, B, H, W)
    return jnp.transpose(y, (1, 0, 2, 3))            # back to NCHW


# ----------------------- pure-JAX reference (sanity check) --------------------
def ref_conv_norm_act(x, w, b, gamma, beta, mean, var, eps=1e-5):
    y = lax.conv_general_dilated(x, w, (1, 1), "SAME",
                                 dimension_numbers=("NCHW", "OIHW", "NCHW"))
    y = y + b[None, :, None, None]
    y = (y - mean[None, :, None, None]) * lax.rsqrt(var + eps)[None, :, None, None]
    y = y * gamma[None, :, None, None] + beta[None, :, None, None]
    return jnp.maximum(y, 0.0)


# ----------------------------------- main --------------------------------------
if __name__ == "__main__":
    key = jax.random.PRNGKey(0)
    kx, kw, kb, kg, kbe, km, kv = jax.random.split(key, 7)

    B, Cin, H, W = 2, 4, 16, 16
    Cout, K = 16, 3

    x = jax.random.normal(kx, (B, Cin, H, W), jnp.float32)
    w = jax.random.normal(kw, (Cout, Cin, K, K), jnp.float32) * 0.1
    b = jax.random.normal(kb, (Cout,), jnp.float32) * 0.1
    gamma = 1.0 + 0.1 * jax.random.normal(kg, (Cout,), jnp.float32)
    beta = 0.1 * jax.random.normal(kbe, (Cout,), jnp.float32)
    mean = 0.1 * jax.random.normal(km, (Cout,), jnp.float32)
    var = 1.0 + 0.1 * jax.random.uniform(kv, (Cout,), jnp.float32)

    # one-time parameter fold (BN scale -> weight, conv bias + BN shift -> bias)
    w2d, bias = fold_conv_bn_params(w, b, gamma, beta, mean, var)

    out = conv_norm_act(x, w2d, bias, k=K)
    out = jax.block_until_ready(out)
    assert out.shape == (B, Cout, H, W) and out.dtype == jnp.float32

    want = ref_conv_norm_act(x, w, b, gamma, beta, mean, var)
    assert jnp.allclose(out, want, atol=1e-4, rtol=1e-4), \
        float(jnp.max(jnp.abs(out - want)))

    print("KERNEL_OK")
</pallas_src>

<mosaic_0001>
module attributes {stable_mosaic.version = 11 : i64} {
  func.func @conv_bn_relu_kernel(%arg0: i32, %arg1: memref<40x512xf32, #tpu.memory_space<vmem>>, %arg2: memref<16x40xf32, #tpu.memory_space<vmem>>, %arg3: memref<16x1xf32, #tpu.memory_space<vmem>>, %arg4: memref<16x512xf32, #tpu.memory_space<vmem>>) attributes {dimension_semantics = [#tpu.dimension_semantics<parallel>], iteration_bounds = array<i64: 1>, scalar_prefetch = 0 : i64, scratch_operands = 0 : i64, tpu.core_type = #tpu.core_type<tc>, window_params = [{transform_indices = @transform_0, window_bounds = array<i64: 40, 512>}, {pipeline_mode = #tpu.pipeline_mode<synchronous>, transform_indices = @transform_1, window_bounds = array<i64: 16, 40>}, {pipeline_mode = #tpu.pipeline_mode<synchronous>, transform_indices = @transform_2, window_bounds = array<i64: 16, 1>}, {transform_indices = @transform_3, window_bounds = array<i64: 16, 512>}]} {
    %c0 = arith.constant 0 : index
    %c0_0 = arith.constant 0 : index
    %0 = vector.load %arg2[%c0, %c0_0] : memref<16x40xf32, #tpu.memory_space<vmem>>, vector<16x40xf32>
    %c0_1 = arith.constant 0 : index
    %c0_2 = arith.constant 0 : index
    %1 = vector.load %arg1[%c0_1, %c0_2] : memref<40x512xf32, #tpu.memory_space<vmem>>, vector<40x512xf32>
    %cst = arith.constant dense<0.000000e+00> : vector<16x512xf32>
    %2 = tpu.matmul %0, %1, %cst {dimension_numbers = #tpu.dot_dimension_numbers<[1], [0], [0], [1], [0, 0, 1, 1], [], []>} : vector<16x40xf32>, vector<40x512xf32>, vector<16x512xf32> -> vector<16x512xf32>
    %c0_3 = arith.constant 0 : index
    %c0_4 = arith.constant 0 : index
    %3 = vector.load %arg3[%c0_3, %c0_4] : memref<16x1xf32, #tpu.memory_space<vmem>>, vector<16x1xf32>
    %4 = vector.broadcast %3 : vector<16x1xf32> to vector<16x512xf32>
    %5 = arith.addf %2, %4 : vector<16x512xf32>
    %cst_5 = arith.constant 0.000000e+00 : f32
    %6 = vector.broadcast %cst_5 : f32 to vector<16x512xf32>
    %7 = arith.maximumf %5, %6 : vector<16x512xf32>
    %c0_6 = arith.constant 0 : index
    %c0_7 = arith.constant 0 : index
    %8 = vector.load %arg4[%c0_6, %c0_7] : memref<16x512xf32, #tpu.memory_space<vmem>>, vector<16x512xf32>
    tpu.vector_store %arg4[%c0_6, %c0_7], %7 {strides = array<i32>} : memref<16x512xf32, #tpu.memory_space<vmem>>, vector<16x512xf32>,
    return
  }
  func.func @transform_0(%arg0: i32) -> (i32, i32) {
    %c0_i32 = arith.constant 0 : i32
    %c0_i32_0 = arith.constant 0 : i32
    return %c0_i32, %arg0 : i32, i32
  }
  func.func @transform_1(%arg0: i32) -> (i32, i32) {
    %c0_i32 = arith.constant 0 : i32
    %c0_i32_0 = arith.constant 0 : i32
    %c0_i32_1 = arith.constant 0 : i32
    return %c0_i32, %c0_i32_0 : i32, i32
  }
  func.func @transform_2(%arg0: i32) -> (i32, i32) {
    %c0_i32 = arith.constant 0 : i32
    %c0_i32_0 = arith.constant 0 : i32
    %c0_i32_1 = arith.constant 0 : i32
    return %c0_i32, %c0_i32_0 : i32, i32
  }
  func.func @transform_3(%arg0: i32) -> (i32, i32) {
    %c0_i32 = arith.constant 0 : i32
    %c0_i32_0 = arith.constant 0 : i32
    return %c0_i32, %arg0 : i32, i32
  }
}

</mosaic_0001>

<bundles_post_ra>
// kernel: conv_norm_act.1
= control target key start
LH: loop header
LB: loop body
LE: loop exit
PB: predicated region body
PF: predicated region fallthrough
CT: control target
= control target key end

     0   :  { %v236_v3 = vmov 0.0   ;;  %vm48_vm0 = vcmask 326656   ;;  %v237_v24 = vmov 0   ;;  %s358_s0 = inlined_call_operand.vmem [shape: f32[40,512], index: 0, kind: input, shape index: {}]   ;;  %s359_s1 = inlined_call_operand.vmem [shape: f32[16,40], index: 1, kind: input, shape index: {}]   ;;  %s360_s2 = inlined_call_operand.vmem [shape: f32[16,1], index: 2, kind: input, shape index: {}]   ;;  %s361_s3 = inlined_call_operand.vmem [shape: f32[16,512], index: 3, kind: output, shape index: {}]  }
   0x1   :  { %v33_v0 = vld [vmem:[%s358_s0 + $0x88] sm:$0xff]  ;;  %v35_v1 = vld [vmem:[%s358_s0 + $0x98] sm:$0xff]  ;;  %v32_v2 = vld [vmem:[%s358_s0 + $0x80] sm:$0xff]  ;;  %119 = vmatprep.mubr.f32.mxu0 %v236_v3  ;;  %196 = vmatprep.mubr.f32.mxu1 %v236_v3 }
   0x2   :  { %77 = vmatprep.subr.mxu0 %v33_v0  ;;  %154 = vmatprep.subr.mxu1 %v35_v1  ;;  %v34_v4 = vld [vmem:[%s358_s0 + $0x90] sm:$0xff]  ;;  %v29_v5 = vld [vmem:[%s358_s0 + $0x68] sm:$0xff]  ;;  %v31_v6 = vld [vmem:[%s358_s0 + $0x78] sm:$0xff] }
   0x3   :  { %78 = vmatpush1.msra.mxu0 %v32_v2  ;;  %155 = vmatpush1.msra.mxu1 %v34_v4  ;;  %v28_v7 = vld [vmem:[%s358_s0 + $0x60] sm:$0xff]  ;;  %v30_v8 = vld [vmem:[%s358_s0 + $0x70] sm:$0xff]  ;;  %v25_v9 = vld [vmem:[%s358_s0 + $0x48] sm:$0xff] }
   0x4   :  { %79 = vmatprep.subr.mxu0 %v29_v5  ;;  %156 = vmatprep.subr.mxu1 %v31_v6  ;;  %v27_v10 = vld [vmem:[%s358_s0 + $0x58] sm:$0xff]  ;;  %v24_v11 = vld [vmem:[%s358_s0 + $0x40] sm:$0xff]  ;;  %v26_v12 = vld [vmem:[%s358_s0 + $0x50] sm:$0xff] }
   0x5   :  { %80 = vmatpush1.msra.mxu0 %v28_v7  ;;  %157 = vmatpush1.msra.mxu1 %v30_v8  ;;  %v21_v13 = vld [vmem:[%s358_s0 + $0x28] sm:$0xff]  ;;  %v23_v14 = vld [vmem:[%s358_s0 + $0x38] sm:$0xff]  ;;  %v20_v15 = vld [vmem:[%s358_s0 + $0x20] sm:$0xff] }
   0x6   :  { %81 = vmatprep.subr.mxu0 %v25_v9  ;;  %158 = vmatprep.subr.mxu1 %v27_v10  ;;  %v22_v16 = vld [vmem:[%s358_s0 + $0x30] sm:$0xff]  ;;  %v17_v17 = vld [vmem:[%s358_s0 + $0x8] sm:$0xff]  ;;  %v19_v18 = vld [vmem:[%s358_s0 + $0x18] sm:$0xff] }
   0x7   :  { %82 = vmatpush1.msra.mxu0 %v24_v11  ;;  %159 = vmatpush1.msra.mxu1 %v26_v12  ;;  %v16_v19 = vld [vmem:[%s358_s0] sm:$0xff]  ;;  %v18_v20 = vld [vmem:[%s358_s0 + $0x10] sm:$0xff]  ;;  %v15_v23 = vld [vmem:[%s359_s1 + $0x8] sm:$0xff] }
   0x8   :  { %83 = vmatprep.subr.mxu0 %v21_v13  ;;  %160 = vmatprep.subr.mxu1 %v23_v14  ;;  %v14_v21 = vld [vmem:[%s359_s1] sm:$0xff]  ;;  %v37_v25 = vld [vmem:[%s360_s2 + $0x8] sm:$0xff] }
   0x9   :  { %84 = vmatpush1.msra.mxu0 %v20_v15  ;;  %161 = vmatpush1.msra.mxu1 %v22_v16  ;;  %v36_v22 = vld [vmem:[%s360_s2] sm:$0xff] }
   0xa   :  { %85 = vmatprep.subr.mxu0 %v17_v17  ;;  %162 = vmatprep.subr.mxu1 %v19_v18 }
   0xb   :  { %86 = vmatpush1.msra.mxu0 %v16_v19  ;;  %163 = vmatpush1.msra.mxu1 %v18_v20 }
   0xc   :  { %229 = vmatmul.mubr.msk.f32.vlgmr.msra.gmra.mxu0 %vm48_vm0, %v14_v21  ;;  %231 = vmatmul.mubr.msk.f32.vlgmr.msra.gmra.mxu1 %vm48_vm0, %v14_v21 }
   0xd   :  { %125 = vmatprep.mubr.f32.mxu0 %v236_v3  ;;  %202 = vmatprep.mubr.f32.mxu1 %v236_v3 }
   0xe   :  { %235 = vset.pattern.permute.xlu0 %v237_v24 }
   0xf   :  { %40 = vperm.xlu0 %235, %v36_v22  }
  0x10   :  { %230 = vmatmul.mubr.msk.f32.gmra.mxu0 %vm48_vm0, %v15_v23  ;;  %232 = vmatmul.mubr.msk.f32.gmra.mxu1 %vm48_vm0, %v15_v23 }
  0x13   :  { %45 = vperm.xlu0 %235, %v37_v25  }
  0x8a   :  { %v41_v26 = vpop.permute.xlu0 %40 }
  0x8e   :  { %v46_v35 = vpop.permute.xlu0 %45 }
  0xcc   :  { %v121_v27 = vpop.f32.mrf.mxu0  ;;  %v198_v28 = vpop.f32.mrf.mxu1 }
  0xcd   :  { %v122_v29 = vadd.f32 %v121_v27, %v41_v26  ;;  %v199_v30 = vadd.f32 %v198_v28, %v41_v26 }
  0xce   :  { %v123_v31 = vpop.f32.mrf.mxu0  ;;  %v200_v32 = vpop.f32.mrf.mxu1 }
  0xcf   :  { %v209_v33 = vmax.f32 %v122_v29, 0.0  ;;  %v211_v34 = vmax.f32 %v199_v30, 0.0  ;;  %v124_v36 = vadd.f32 %v123_v31, %v41_v26  ;;  %v201_v37 = vadd.f32 %v200_v32, %v41_v26 }
  0xd0   :  { %v127_v38 = vpop.f32.mrf.mxu0  ;;  %v204_v39 = vpop.f32.mrf.mxu1 }
  0xd1   :  { %217 = vst [vmem:[%s361_s3] sm:$0xff] %v209_v33  ;;  %219 = vst [vmem:[%s361_s3 + $0x10] sm:$0xff] %v211_v34  ;;  %v210_v40 = vmax.f32 %v124_v36, 0.0  ;;  %v212_v41 = vmax.f32 %v201_v37, 0.0  ;;  %v128_v42 = vadd.f32 %v127_v38, %v46_v35  ;;  %v205_v43 = vadd.f32 %v204_v39, %v46_v35 }
  0xd2   :  { %v129_v44 = vpop.f32.mrf.mxu0  ;;  %v206_v45 = vpop.f32.mrf.mxu1 }
  0xd3   :  { %218 = vst [vmem:[%s361_s3 + $0x8] sm:$0xff] %v210_v40  ;;  %220 = vst [vmem:[%s361_s3 + $0x18] sm:$0xff] %v212_v41  ;;  %v213_v46 = vmax.f32 %v128_v42, 0.0  ;;  %v215_v47 = vmax.f32 %v205_v43, 0.0  ;;  %v130_v48 = vadd.f32 %v129_v44, %v46_v35  ;;  %v207_v49 = vadd.f32 %v206_v45, %v46_v35 }
  0xd5   :  { %221 = vst [vmem:[%s361_s3 + $0x20] sm:$0xff] %v213_v46  ;;  %223 = vst [vmem:[%s361_s3 + $0x30] sm:$0xff] %v215_v47  ;;  %v214_v50 = vmax.f32 %v130_v48, 0.0  ;;  %v216_v51 = vmax.f32 %v207_v49, 0.0 }
  0xd7   :  { %222 = vst [vmem:[%s361_s3 + $0x28] sm:$0xff] %v214_v50  ;;  %224 = vst [vmem:[%s361_s3 + $0x38] sm:$0xff] %v216_v51 }

</bundles_post_ra>
